<compile_context>
chip_gen: v7x
topology: tpu7x:2x2x1
jax: 0.10.0
libtpu: 0.0.40
codegen_flags: <defaults>
</compile_context>

<pallas_src>
import functools

import jax
import jax.numpy as jnp
from jax import lax
from jax.experimental import pallas as pl
from jax.experimental.pallas import tpu as pltpu


def _vmem_capacity_bytes():
    """Physical VMEM per core (64 MiB on v7x, 128 MiB on v5e/v6e)."""
    try:
        return int(pltpu.get_tpu_info().vmem_capacity_bytes)
    except Exception:
        return 64 * 1024 * 1024          # conservative default (v7x)


def _default_exp_dtype():
    """bf16 exp on bf16-capable VPU/EUP (v6e / v7x); f32 on v5e and older."""
    try:
        kind = jax.devices()[0].device_kind.lower()
    except Exception:
        return jnp.float32
    if any(v in kind for v in ("v2", "v3", "v4", "v5")):
        return jnp.float32
    return jnp.bfloat16


def _choose_tiles(n, c, logit_bytes, tgt_bytes, mask_bytes, vmem_cap,
                  lane_tile=None, chunk=None):
    """Pick (TN, CHUNK).

    TN    = lane tile per grid step (big DMAs, few grid steps).
    CHUNK = in-kernel compute chunk (bounds the live (C, CHUNK) f32 temporaries).
    Invariants: N % TN == 0, TN % CHUNK == 0, CHUNK % 128 == 0 (or CHUNK == N).
    """
    if n % 128 != 0:
        return n, n                       # full-extent block is the only legal option

    # (C, CHUNK) f32 temporaries <= ~32 KiB each (~8 vregs)
    if chunk is None:
        chunk = (32 * 1024 // (4 * c)) // 128 * 128
    chunk = max(128, min(int(chunk), 1024, n))
    chunk = (chunk // 128) * 128
    while n % chunk:
        chunk -= 128

    if lane_tile is None:
        per_lane_in = c * logit_bytes + tgt_bytes + mask_bytes
        in_budget = min(vmem_cap // 4, 16 * 1024 * 1024)   # double-buffered inputs
        tn = min(n,
                 (4 * 1024 * 1024) // max(c * logit_bytes, 1),   # ~4 MiB logits/step
                 in_budget // (2 * per_lane_in))
    else:
        tn = int(lane_tile)
    tn = max(128, min(tn, n))
    chunk = min(chunk, tn)
    tn = max(chunk, (tn // chunk) * chunk)
    while tn > chunk and n % tn:
        tn -= chunk
    if n % tn:
        tn = chunk                         # chunk divides n by construction
    return tn, chunk


def _masked_ce_kernel(*refs, num_classes, label_smoothing, chunk, exp_dtype,
                      has_mask):
    """Grid = (B, N // TN).  One step: one lane-tile of one batch element.

    refs (has_mask): logits (1,C,TN), target (1,1,TN) int, mask (1,1,TN) bf16,
                     out (1,1,2) f32, wl_vec (1,CHUNK) f32, wm_vec (1,CHUNK) f32
    refs (no mask):  logits, target, out (1,1,1), wl_vec
    """
    if has_mask:
        logits_ref, target_ref, mask_ref, out_ref, wl_vec, wm_vec = refs
    else:
        logits_ref, target_ref, out_ref, wl_vec = refs
        mask_ref = None
        wm_vec = None

    n = pl.program_id(1)
    tn = logits_ref.shape[-1]
    num_chunks = tn // chunk
    eps = label_smoothing
    inv_c = 1.0 / num_classes

    @pl.when(n == 0)
    def _init():
        wl_vec[...] = jnp.zeros_like(wl_vec)
        if has_mask:
            wm_vec[...] = jnp.zeros_like(wm_vec)

    def chunk_body(ci, carry):
        off = pl.multiple_of(ci * chunk, chunk) if num_chunks > 1 else 0
        x = logits_ref[0, :, pl.ds(off, chunk)].astype(jnp.float32)   # (C, CK)
        t = target_ref[0, :, pl.ds(off, chunk)].astype(jnp.int32)     # (1, CK)

        xmax = jnp.max(x, axis=0, keepdims=True)                      # (1, CK)
        xs = x - xmax                                                 # (C, CK)
        # xmax cancels algebraically:
        #   loss = log(sum exp(xs)) - (1-eps)*xs[target] - eps*mean(xs)
        e = jnp.exp(xs.astype(exp_dtype))                             # bf16 on v6e/v7x
        sum_e = jnp.sum(e.astype(jnp.float32), axis=0, keepdims=True)
        cls = lax.broadcasted_iota(jnp.int32, xs.shape, 0)
        xs_t = jnp.sum(jnp.where(cls == t, xs, 0.0), axis=0, keepdims=True)
        loss = jnp.log(sum_e) - (1.0 - eps) * xs_t
        if eps != 0.0:
            loss = loss - eps * (jnp.sum(xs, axis=0, keepdims=True) * inv_c)

        if has_mask:
            m = mask_ref[0, :, pl.ds(off, chunk)].astype(jnp.float32)
            wl_vec[...] += loss * m                                   # VPU-only adds
            wm_vec[...] += m
        else:
            wl_vec[...] += loss
        return carry

    if num_chunks == 1:
        chunk_body(0, 0)
    else:
        lax.fori_loop(0, num_chunks, chunk_body, 0, unroll=(num_chunks <= 8))

    @pl.when(n == pl.num_programs(1) - 1)
    def _finalize():
        # single cross-lane (XLU) reduce, only once per batch element
        out_ref[:, :, 0:1] = jnp.sum(wl_vec[...], axis=1, keepdims=True)[None]
        if has_mask:
            out_ref[:, :, 1:2] = jnp.sum(wm_vec[...], axis=1, keepdims=True)[None]


def masked_cross_entropy_loss(logits, target, mask=None, *,
                              patch_size=(4, 4), stride=1, label_smoothing=0.0,
                              lane_tile=None, chunk=None, exp_dtype=None):
    """JAX/Pallas equivalent of MaskedCrossEntropyLoss.forward."""
    B, C, H, W = logits.shape
    N = H * W
    scale = patch_size[0] // stride

    if exp_dtype is None:
        exp_dtype = _default_exp_dtype()

    x = logits.reshape(B, C, N)                      # native dtype (e.g. bf16)

    if C <= 127:
        tgt_dtype = jnp.int8
    elif C <= 32767:
        tgt_dtype = jnp.int16
    else:
        tgt_dtype = jnp.int32
    t = target.reshape(B, 1, N).astype(tgt_dtype)

    has_mask = mask is not None
    if has_mask:
        nh, nw = H // scale, W // scale
        m = mask.reshape(B, nh, nw).astype(jnp.bfloat16)
        # F.interpolate(..., mode='nearest') with integer scale == repeat
        m = jnp.repeat(jnp.repeat(m, scale, axis=1), scale, axis=2)   # (B, H, W)
        m_up = m.reshape(B, 1, N)
        mask_bytes = 2
    else:
        m_up = None
        mask_bytes = 0

    logit_bytes = jnp.dtype(x.dtype).itemsize
    tgt_bytes = jnp.dtype(tgt_dtype).itemsize
    vmem_cap = _vmem_capacity_bytes()
    tn, ck = _choose_tiles(N, C, logit_bytes, tgt_bytes, mask_bytes, vmem_cap,
                           lane_tile=lane_tile, chunk=chunk)
    assert N % tn == 0 and tn % ck == 0, (N, tn, ck)
    nt = N // tn

    kernel = functools.partial(_masked_ce_kernel, num_classes=C,
                               label_smoothing=float(label_smoothing),
                               chunk=ck, exp_dtype=exp_dtype, has_mask=has_mask)

    per_lane_in = C * logit_bytes + tgt_bytes + mask_bytes
    dbuf_in = 2 * tn * per_lane_in               # double-buffered input blocks
    interm = 4 * C * ck * 4                      # in-kernel f32 temporaries
    vmem_limit = int(max(16 << 20,
                         min(int(0.8 * vmem_cap), dbuf_in + interm + (8 << 20))))

    cost = pl.CostEstimate(
        flops=7 * B * C * N,
        transcendentals=B * N * (C + 1),
        bytes_accessed=B * N * per_lane_in + B * 2 * 4)

    in_specs = [pl.BlockSpec((1, C, tn), lambda b, n: (b, 0, n)),
                pl.BlockSpec((1, 1, tn), lambda b, n: (b, 0, n))]
    operands = [x, t]
    scratch = [pltpu.VMEM((1, ck), jnp.float32)]
    if has_mask:
        in_specs.append(pl.BlockSpec((1, 1, tn), lambda b, n: (b, 0, n)))
        operands.append(m_up)
        scratch.append(pltpu.VMEM((1, ck), jnp.float32))
    out_cols = 2 if has_mask else 1

    out = pl.pallas_call(
        kernel,
        out_shape=jax.ShapeDtypeStruct((B, 1, out_cols), jnp.float32),
        grid_spec=pltpu.PrefetchScalarGridSpec(
            num_scalar_prefetch=0,
            grid=(B, nt),
            in_specs=in_specs,
            out_specs=pl.BlockSpec((1, 1, out_cols), lambda b, n: (b, 0, 0)),
            scratch_shapes=scratch),
        compiler_params=pltpu.CompilerParams(
            dimension_semantics=("parallel", "arbitrary"),
            vmem_limit_bytes=vmem_limit),
        cost_estimate=cost,
    )(*operands)

    if not has_mask:
        # equal pixel counts per batch -> mean of sums / (B*N) == global mean
        return jnp.sum(out[:, 0, 0]) / (B * N)

    wl = out[:, 0, 0]                        # sum(loss * mask) per batch element
    wm = out[:, 0, 1]                        # sum(mask)        per batch element
    per = wl / wm                            # NaN where the batch mask is empty

    valid = jnp.logical_not(jnp.isnan(per))
    nanmean = (jnp.sum(jnp.where(valid, per, 0.0))
               / jnp.maximum(jnp.sum(valid.astype(jnp.float32)), 1.0))
    total_mask = jnp.sum(wm)
    # torch returns tensor(0) when the whole mask is empty; here a float32 0.0
    return jnp.where(total_mask == 0.0, jnp.float32(0.0), nanmean)


def _reference_loss(logits, target, mask, *, patch_size, stride, label_smoothing):
    """Pure-JAX reference matching torch F.cross_entropy + mask logic."""
    B, C, H, W = logits.shape
    scale = patch_size[0] // stride
    logp = jax.nn.log_softmax(logits.astype(jnp.float32), axis=1)
    nll = -jnp.take_along_axis(logp, target[:, None].astype(jnp.int32), axis=1)[:, 0]
    smooth = -jnp.mean(logp, axis=1)
    loss = (1.0 - label_smoothing) * nll + label_smoothing * smooth   # (B, H, W)
    if mask is None:
        return jnp.mean(loss)
    nh, nw = H // scale, W // scale
    m = mask.reshape(B, nh, nw).astype(jnp.float32)
    m = jnp.repeat(jnp.repeat(m, scale, axis=1), scale, axis=2)
    per = (loss * m).reshape(B, -1).sum(axis=1) / m.reshape(B, -1).sum(axis=1)
    valid = jnp.logical_not(jnp.isnan(per))
    nanmean = (jnp.sum(jnp.where(valid, per, 0.0))
               / jnp.maximum(jnp.sum(valid.astype(jnp.float32)), 1.0))
    return jnp.where(jnp.sum(m) == 0.0, jnp.float32(0.0), nanmean)


if __name__ == "__main__":
    # Module config: patch_size=(4,4), stride=1, label_smoothing=0.1 -> scale 4.
    patch_size = (4, 4)
    stride = 1
    label_smoothing = 0.1

    B, C, H, W = 2, 8, 16, 16
    scale = patch_size[0] // stride
    nh, nw = H // scale, W // scale

    key = jax.random.PRNGKey(0)
    k1, k2, k3 = jax.random.split(key, 3)
    logits = jax.random.normal(k1, (B, C, H, W), dtype=jnp.float32).astype(jnp.bfloat16)
    target = jax.random.randint(k2, (B, H, W), 0, C, dtype=jnp.int32)
    # batch 0: random 0/1 patches; batch 1: all-zero mask -> NaN / nanmean path.
    mask0 = jax.random.bernoulli(k3, 0.5, (1, nh * nw)).astype(jnp.float32)
    mask1 = jnp.zeros((1, nh * nw), jnp.float32)
    mask = jnp.concatenate([mask0, mask1], axis=0)                    # (B, nh*nw)

    ref = _reference_loss(logits, target, mask, patch_size=patch_size,
                          stride=stride, label_smoothing=label_smoothing)
    ref_nomask = _reference_loss(logits, target, None, patch_size=patch_size,
                                 stride=stride, label_smoothing=label_smoothing)

    # 1) default path (auto tiles, auto exp dtype: bf16 on v6e/v7x, f32 on v5e)
    out_auto = jax.block_until_ready(
        masked_cross_entropy_loss(logits, target, mask,
                                  patch_size=patch_size, stride=stride,
                                  label_smoothing=label_smoothing))
    # 2) f32 exp forced (tight tolerance check)
    out_f32 = jax.block_until_ready(
        masked_cross_entropy_loss(logits, target, mask,
                                  patch_size=patch_size, stride=stride,
                                  label_smoothing=label_smoothing,
                                  exp_dtype=jnp.float32))
    # 3) small lane tile -> multi-grid-step accumulation path
    out_tiled = jax.block_until_ready(
        masked_cross_entropy_loss(logits, target, mask,
                                  patch_size=patch_size, stride=stride,
                                  label_smoothing=label_smoothing,
                                  lane_tile=128, exp_dtype=jnp.float32))
    # 4) forced small chunk -> in-kernel chunked fori_loop path
    out_chunked = jax.block_until_ready(
        masked_cross_entropy_loss(logits, target, mask,
                                  patch_size=patch_size, stride=stride,
                                  label_smoothing=label_smoothing,
                                  chunk=128, exp_dtype=jnp.float32))
    # 5) mask=None path (no mask DMA at all)
    out_nomask = jax.block_until_ready(
        masked_cross_entropy_loss(logits, target, None,
                                  patch_size=patch_size, stride=stride,
                                  label_smoothing=label_smoothing,
                                  exp_dtype=jnp.float32))

    assert jnp.allclose(out_auto, ref, atol=3e-3, rtol=3e-3), (out_auto, ref)
    assert jnp.allclose(out_f32, ref, atol=1e-4, rtol=1e-4), (out_f32, ref)
    assert jnp.allclose(out_tiled, ref, atol=1e-4, rtol=1e-4), (out_tiled, ref)
    assert jnp.allclose(out_chunked, ref, atol=1e-4, rtol=1e-4), (out_chunked, ref)
    assert jnp.allclose(out_nomask, ref_nomask, atol=1e-4, rtol=1e-4), (out_nomask, ref_nomask)
    print("KERNEL_OK")
</pallas_src>

<mosaic_0001>
module attributes {stable_mosaic.version = 11 : i64} {
  func.func @_masked_ce_kernel(%arg0: i32, %arg1: i32, %arg2: memref<1x8x256xbf16, #tpu.memory_space<vmem>>, %arg3: memref<1x1x256xi8, #tpu.memory_space<vmem>>, %arg4: memref<1x1x256xbf16, #tpu.memory_space<vmem>>, %arg5: memref<1x1x2xf32, #tpu.memory_space<vmem>>, %arg6: memref<1x256xf32, #tpu.memory_space<vmem>>, %arg7: memref<1x256xf32, #tpu.memory_space<vmem>>) attributes {dimension_semantics = [#tpu.dimension_semantics<parallel>, #tpu.dimension_semantics<arbitrary>], iteration_bounds = array<i64: 2, 1>, scalar_prefetch = 0 : i64, scratch_operands = 2 : i64, tpu.core_type = #tpu.core_type<tc>, window_params = [{transform_indices = @transform_0, window_bounds = array<i64: 1, 8, 256>}, {transform_indices = @transform_1, window_bounds = array<i64: 1, 1, 256>}, {transform_indices = @transform_2, window_bounds = array<i64: 1, 1, 256>}, {transform_indices = @transform_3, window_bounds = array<i64: 1, 1, 2>}]} {
    %c0_i32 = arith.constant 0 : i32
    %0 = arith.cmpi eq, %arg1, %c0_i32 : i32
    %1 = arith.extui %0 : i1 to i32
    %c0_i32_0 = arith.constant 0 : i32
    %2 = arith.cmpi ne, %1, %c0_i32_0 : i32
    scf.if %2 {
      %cst_26 = arith.constant 0.000000e+00 : f32
      %49 = vector.broadcast %cst_26 : f32 to vector<1x256xf32>
      %c0_27 = arith.constant 0 : index
      %c0_28 = arith.constant 0 : index
      %50 = vector.load %arg6[%c0_27, %c0_28] : memref<1x256xf32, #tpu.memory_space<vmem>>, vector<1x256xf32>
      tpu.vector_store %arg6[%c0_27, %c0_28], %49 {strides = array<i32>} : memref<1x256xf32, #tpu.memory_space<vmem>>, vector<1x256xf32>,
      %cst_29 = arith.constant 0.000000e+00 : f32
      %51 = vector.broadcast %cst_29 : f32 to vector<1x256xf32>
      %c0_30 = arith.constant 0 : index
      %c0_31 = arith.constant 0 : index
      %52 = vector.load %arg7[%c0_30, %c0_31] : memref<1x256xf32, #tpu.memory_space<vmem>>, vector<1x256xf32>
      tpu.vector_store %arg7[%c0_30, %c0_31], %51 {strides = array<i32>} : memref<1x256xf32, #tpu.memory_space<vmem>>, vector<1x256xf32>,
    } else {
    }
    %c0 = arith.constant 0 : index
    %c0_1 = arith.constant 0 : index
    %c0_2 = arith.constant 0 : index
    %3 = vector.load %arg2[%c0, %c0_1, %c0_2] : memref<1x8x256xbf16, #tpu.memory_space<vmem>>, vector<1x8x256xbf16>
    %4 = vector.shape_cast %3 : vector<1x8x256xbf16> to vector<8x256xbf16>
    %5 = arith.extf %4 : vector<8x256xbf16> to vector<8x256xf32>
    %c0_3 = arith.constant 0 : index
    %c0_4 = arith.constant 0 : index
    %c0_5 = arith.constant 0 : index
    %6 = vector.load %arg3[%c0_3, %c0_4, %c0_5] : memref<1x1x256xi8, #tpu.memory_space<vmem>>, vector<1x1x256xi8>
    %7 = vector.shape_cast %6 : vector<1x1x256xi8> to vector<1x256xi8>
    %8 = arith.extsi %7 : vector<1x256xi8> to vector<1x256xi32>
    %cst = arith.constant dense<0xFF800000> : vector<256xf32>
    %9 = vector.multi_reduction <maximumf>, %5, %cst [0] : vector<8x256xf32> to vector<256xf32>
    %10 = vector.shape_cast %9 : vector<256xf32> to vector<1x256xf32>
    %11 = vector.broadcast %10 : vector<1x256xf32> to vector<8x256xf32>
    %12 = arith.subf %5, %11 : vector<8x256xf32>
    %13 = arith.truncf %12 : vector<8x256xf32> to vector<8x256xbf16>
    %14 = math.exp %13 : vector<8x256xbf16>
    %15 = arith.extf %14 : vector<8x256xbf16> to vector<8x256xf32>
    %cst_6 = arith.constant dense<0.000000e+00> : vector<256xf32>
    %16 = vector.multi_reduction <add>, %15, %cst_6 [0] : vector<8x256xf32> to vector<256xf32>
    %17 = vector.shape_cast %16 : vector<256xf32> to vector<1x256xf32>
    %18 = tpu.iota {dimensions = array<i32: 0>} : vector<8x256xi32>
    %19 = vector.broadcast %8 : vector<1x256xi32> to vector<8x256xi32>
    %20 = arith.cmpi eq, %18, %19 : vector<8x256xi32>
    %cst_7 = arith.constant 0.000000e+00 : f32
    %21 = vector.broadcast %cst_7 : f32 to vector<8x256xf32>
    %22 = arith.select %20, %12, %21 : vector<8x256xi1>, vector<8x256xf32>
    %cst_8 = arith.constant dense<0.000000e+00> : vector<256xf32>
    %23 = vector.multi_reduction <add>, %22, %cst_8 [0] : vector<8x256xf32> to vector<256xf32>
    %24 = vector.shape_cast %23 : vector<256xf32> to vector<1x256xf32>
    %25 = math.log %17 : vector<1x256xf32>
    %cst_9 = arith.constant 0.899999976 : f32
    %26 = vector.broadcast %cst_9 : f32 to vector<1x256xf32>
    %27 = arith.mulf %26, %24 : vector<1x256xf32>
    %28 = arith.subf %25, %27 : vector<1x256xf32>
    %cst_10 = arith.constant dense<0.000000e+00> : vector<256xf32>
    %29 = vector.multi_reduction <add>, %12, %cst_10 [0] : vector<8x256xf32> to vector<256xf32>
    %30 = vector.shape_cast %29 : vector<256xf32> to vector<1x256xf32>
    %cst_11 = arith.constant 1.250000e-01 : f32
    %31 = vector.broadcast %cst_11 : f32 to vector<1x256xf32>
    %32 = arith.mulf %30, %31 : vector<1x256xf32>
    %cst_12 = arith.constant 1.000000e-01 : f32
    %33 = vector.broadcast %cst_12 : f32 to vector<1x256xf32>
    %34 = arith.mulf %33, %32 : vector<1x256xf32>
    %35 = arith.subf %28, %34 : vector<1x256xf32>
    %c0_13 = arith.constant 0 : index
    %c0_14 = arith.constant 0 : index
    %c0_15 = arith.constant 0 : index
    %36 = vector.load %arg4[%c0_13, %c0_14, %c0_15] : memref<1x1x256xbf16, #tpu.memory_space<vmem>>, vector<1x1x256xbf16>
    %37 = vector.shape_cast %36 : vector<1x1x256xbf16> to vector<1x256xbf16>
    %38 = arith.extf %37 : vector<1x256xbf16> to vector<1x256xf32>
    %c0_16 = arith.constant 0 : index
    %c0_17 = arith.constant 0 : index
    %39 = vector.load %arg6[%c0_16, %c0_17] : memref<1x256xf32, #tpu.memory_space<vmem>>, vector<1x256xf32>
    %40 = arith.mulf %35, %38 : vector<1x256xf32>
    %41 = arith.addf %39, %40 : vector<1x256xf32>
    %c0_18 = arith.constant 0 : index
    %c0_19 = arith.constant 0 : index
    %42 = vector.load %arg6[%c0_18, %c0_19] : memref<1x256xf32, #tpu.memory_space<vmem>>, vector<1x256xf32>
    tpu.vector_store %arg6[%c0_18, %c0_19], %41 {strides = array<i32>} : memref<1x256xf32, #tpu.memory_space<vmem>>, vector<1x256xf32>,
    %c0_20 = arith.constant 0 : index
    %c0_21 = arith.constant 0 : index
    %43 = vector.load %arg7[%c0_20, %c0_21] : memref<1x256xf32, #tpu.memory_space<vmem>>, vector<1x256xf32>
    %44 = arith.addf %43, %38 : vector<1x256xf32>
    %c0_22 = arith.constant 0 : index
    %c0_23 = arith.constant 0 : index
    %45 = vector.load %arg7[%c0_22, %c0_23] : memref<1x256xf32, #tpu.memory_space<vmem>>, vector<1x256xf32>
    tpu.vector_store %arg7[%c0_22, %c0_23], %44 {strides = array<i32>} : memref<1x256xf32, #tpu.memory_space<vmem>>, vector<1x256xf32>,
    %c0_i32_24 = arith.constant 0 : i32
    %46 = arith.cmpi eq, %arg1, %c0_i32_24 : i32
    %47 = arith.extui %46 : i1 to i32
    %c0_i32_25 = arith.constant 0 : i32
    %48 = arith.cmpi ne, %47, %c0_i32_25 : i32
    scf.if %48 {
      %c0_26 = arith.constant 0 : index
      %c0_27 = arith.constant 0 : index
      %49 = vector.load %arg6[%c0_26, %c0_27] : memref<1x256xf32, #tpu.memory_space<vmem>>, vector<1x256xf32>
      %cst_28 = arith.constant dense<0.000000e+00> : vector<1xf32>
      %50 = vector.multi_reduction <add>, %49, %cst_28 [1] : vector<1x256xf32> to vector<1xf32>
      %51 = vector.shape_cast %50 : vector<1xf32> to vector<1x1xf32>
      %52 = vector.shape_cast %51 : vector<1x1xf32> to vector<1x1x1xf32>
      %c0_29 = arith.constant 0 : index
      %c0_30 = arith.constant 0 : index
      %c0_31 = arith.constant 0 : index
      %53 = vector.load %arg5[%c0_29, %c0_30, %c0_31] : memref<1x1x2xf32, #tpu.memory_space<vmem>>, vector<1x1x1xf32>
      tpu.vector_store %arg5[%c0_29, %c0_30, %c0_31], %52 {strides = array<i32>} : memref<1x1x2xf32, #tpu.memory_space<vmem>>, vector<1x1x1xf32>,
      %c0_32 = arith.constant 0 : index
      %c0_33 = arith.constant 0 : index
      %54 = vector.load %arg7[%c0_32, %c0_33] : memref<1x256xf32, #tpu.memory_space<vmem>>, vector<1x256xf32>
      %cst_34 = arith.constant dense<0.000000e+00> : vector<1xf32>
      %55 = vector.multi_reduction <add>, %54, %cst_34 [1] : vector<1x256xf32> to vector<1xf32>
      %56 = vector.shape_cast %55 : vector<1xf32> to vector<1x1xf32>
      %57 = vector.shape_cast %56 : vector<1x1xf32> to vector<1x1x1xf32>
      %c0_35 = arith.constant 0 : index
      %c0_36 = arith.constant 0 : index
      %c1 = arith.constant 1 : index
      %58 = vector.load %arg5[%c0_35, %c0_36, %c1] : memref<1x1x2xf32, #tpu.memory_space<vmem>>, vector<1x1x1xf32>
      tpu.vector_store %arg5[%c0_35, %c0_36, %c1], %57 {strides = array<i32>} : memref<1x1x2xf32, #tpu.memory_space<vmem>>, vector<1x1x1xf32>,
    } else {
    }
    return
  }
  func.func @transform_0(%arg0: i32, %arg1: i32) -> (i32, i32, i32) {
    %c0_i32 = arith.constant 0 : i32
    %c0_i32_0 = arith.constant 0 : i32
    return %arg0, %c0_i32, %arg1 : i32, i32, i32
  }
  func.func @transform_1(%arg0: i32, %arg1: i32) -> (i32, i32, i32) {
    %c0_i32 = arith.constant 0 : i32
    %c0_i32_0 = arith.constant 0 : i32
    return %arg0, %c0_i32, %arg1 : i32, i32, i32
  }
  func.func @transform_2(%arg0: i32, %arg1: i32) -> (i32, i32, i32) {
    %c0_i32 = arith.constant 0 : i32
    %c0_i32_0 = arith.constant 0 : i32
    return %arg0, %c0_i32, %arg1 : i32, i32, i32
  }
  func.func @transform_3(%arg0: i32, %arg1: i32) -> (i32, i32, i32) {
    %c0_i32 = arith.constant 0 : i32
    %c0_i32_0 = arith.constant 0 : i32
    %c0_i32_1 = arith.constant 0 : i32
    return %arg0, %c0_i32, %c0_i32_0 : i32, i32, i32
  }
}

</mosaic_0001>

<bundles_post_ra>
// kernel: tpu_custom_call.1
= control target key start
LH: loop header
LB: loop body
LE: loop exit
PB: predicated region body
PF: predicated region fallthrough
CT: control target
= control target key end

     0   :  { %8 = vsyncpa [#allocation5], 0  ;;  %s1038_s0 = inlined_call_operand.hbm [shape: bf16[2,8,256], index: 0, kind: input, shape index: {}]   ;;  %s1039_s1 = inlined_call_operand.vmem [shape: s8[2,1,256], index: 1, kind: input, shape index: {}]   ;;  %s1040_s2 = inlined_call_operand.vmem [shape: bf16[2,1,256], index: 2, kind: input, shape index: {}]   ;;  %s1041_s3 = inlined_call_operand.hbm [shape: f32[2,1,2], index: 3, kind: output, shape index: {}]  }
   0x1   :  { %10 = vsyncpa [#allocation5 + $0x1], 0 }
   0x2   :  { %11 = vsyncpa [#allocation6], 0 }
   0x3   :  { %13 = vsyncpa [#allocation6 + $0x1], 0  ;;  %s818_s12 = smov 0   ;;  %s820_s13 = smov 0  }
   0x4   :  { %s822_s14 = smov 0   ;;  %s824_s15 = smov 0  }
   0x5   :  { %s826_s16 = smov 0   ;;  %s828_s17 = smov 0  }
   0x6 LB: > { %s593_s18 = sadd.s32 4294967295, %s792_s17   ;;  %s594_s19 = sadd.s32 4294967294, %s792_s17   ;;  %s792_s17 = sphi %s828_s17, %s19_s17   ;;  %s788_s16 = sphi %s826_s16, %s1059_s16   ;;  %s784_s15 = sphi %s824_s15, %s1058_s15   ;;  %s780_s14 = sphi %s822_s14, %s1057_s14   ;;  %s776_s13 = sphi %s820_s13, %s1056_s13   ;;  %s772_s12 = sphi %s818_s12, %s1055_s12  }
   0x7   : > { %s31_s20 = sadd.s32 1, %s788_s16  ;;  %s40_s21 = sadd.s32 1, %s780_s14 }
   0x8   : > { %p33_p0 = scmp.ge.s32.totalorder %s31_s20, 2  ;;  %p47_p1 = scmp.ne.s32.totalorder %s780_s14, %s776_s13 }
   0x9   : > { %p48_p2 = scmp.eq.s32.totalorder %s792_s17, 0  ;;  %p53_p3 = scmp.ne.s32.totalorder %s776_s13, %s772_s12 }
   0xa   : > { %s1061_s20 = smov (%p33_p0, %s31_s20), 0  ;;  %p54_p5 = scmp.eq.s32.totalorder %s593_s18, 0 }
   0xb   : > { %p859_p4 = por %p48_p2, %p47_p1  ;;  %s35_s23 = ssub.s32 %s788_s16, %s1061_s20 }
   0xc   : > { %p133_p6 = scmp.eq.s32.totalorder %s593_s18, 1  ;;  %p38_p7 = scmp.eq.s32.totalorder %s35_s23, 0 }
   0xd   : > { %p865_p8 = por %p54_p5, %p53_p3  ;;  %p139_p10 = scmp.eq.s32.totalorder %s594_s19, 1 }
   0xe   : > { %p869_p9 = por %p133_p6, %p47_p1  ;;  %p620_p13 = scmp.lt.s32.totalorder %s792_s17, 2 }
   0xf   : > { %s874_s26 = scalar_select %p38_p7, %s780_s14, %s40_s21  }
  0x10   : > { %s1045_s25 = scalar_select %p869_p9, 1, 0 }
  0x11   : > { %p876_p11 = por %p139_p10, %p53_p3  ;;  %s159_s28 = sand.u32 1, %s780_s14  }
  0x12   : > { %s597_s29 = sshll.u32 %s159_s28, 3  ;;  %s607_s30 = sshll.u32 %s788_s16, 7 }
  0x13   : > { %s1046_s27 = scalar_select %p876_p11, 1, 0 }
  0x14   : > { %s887_s6 = scalar_lea.hbm %s1038_s0, %s607_s30  ;;  %s163_s7 = scalar_lea.vmem [#allocation4], %s597_s29 }
  0x15   : > { %s173_s8 = sshll.u32 %s163_s7, 4  ;;  %p893_p0 = pnand %p620_p13, %p859_p4  ;;  %s889_s8 = int_to_ptr.vmem [resolvable:$true] %s173_s8 }
  0x16   : > { %s160_s10 = scalar_lea.sflag [#allocation5], %s159_s28  ;;  %s680_s11 = scalar_lea.hbm %s887_s6, 128 }
  0x17   : > { %p681_p3 = scmp.ne.s32.totalorder %s887_s6, %s680_s11  ;;  %p682_p5 = pneg %p893_p0 }
  0x18   : > { %s685_s21 = scalar_lea.hbm %s1038_s0, 256  ;;  %p686_p4 = scmp.lt.u32.totalorder %s887_s6, %s1038_s0 }
  0x19   : > { %p683_p6 = pnand %p682_p5, %p681_p3  ;;  %p687_p10 = scmp.lt.u32.totalorder %s685_s21, %s680_s11 }
  0x1a   : > { %p689_p12 = scmp.lt.u32.totalorder %s680_s11, %s887_s6 }
  0x1b   : > { %p684_p7 = pneg %p683_p6  ;;  %p688_p13 = por %p687_p10, %p686_p4 }
  0x1d   : > { %p690_p1 = por %p689_p12, %p688_p13 }
  0x1f   : > { %p691_p2 = pnand %p690_p1, %p684_p7 }
  0x21   : > { %694 = shalt.err (!%p691_p2)
}
  0x22   : > { %s695_s28 = scalar_lea.vmem %s889_s8, 128  ;;  %s794_s29 = smov [#allocation4]  }
  0x23   : > { %p696_p3 = scmp.ne.s32.totalorder %s889_s8, %s695_s28  ;;  %s700_s30 = sshll.u32 %s794_s29, 4  ;;  %s701_s30 = int_to_ptr.vmem [resolvable:$false] %s700_s30 }
  0x24   : > { %s702_s4 = scalar_lea.vmem %s701_s30, 256  ;;  %p703_p9 = scmp.lt.s32.totalorder %s889_s8, %s701_s30 }
  0x25   : > { %p698_p6 = pnand %p696_p3, %p682_p5  ;;  %p704_p4 = scmp.lt.s32.totalorder %s702_s4, %s695_s28 }
  0x27   : > { %p699_p11 = pneg %p698_p6  ;;  %p705_p10 = por %p704_p4, %p703_p9 }
  0x29   : > { %p706_p12 = pnand %p705_p10, %p699_p11 }
  0x2b   : > { %709 = shalt.err (!%p706_p12)
}
  0x2c   : > { %615 = dma.hbm_to_vmem [thread:$0]  (!%p893_p0), %s887_s6, 128, %s889_s8, %s160_s10  }
  0x2d   : > { %p1048_p1 = scmp.lt.s32.totalorder %s792_s17, 3  ;;  %p1049_p2 = scmp.ge.s32.totalorder %s792_s17, 1 }
  0x2f   : > { %p203_p5 = pnand %p1049_p2, %p1048_p1 }
  0x30   : > { %s929_s5 = sand.u32 (!%p203_p5), 1, %s776_s13  }
  0x31   : > { %206 = sbr.rel (%p203_p5) target bundleno = 305 (0x131), region = 32  ;;  %s601_s7 = sshll.u32 (!%p203_p5), %s929_s5, 3 }
  0x32   : > { %s209_s11 = scalar_lea.sflag (!%p203_p5), [#allocation5], %s929_s5  ;;  %s212_s18 = scalar_lea.vmem (!%p203_p5), [#allocation4], %s601_s7 }
  0x38   : > { %763 = dma.done.wait (%p865_p8), %s209_s11, 128  }
  0x39   : > { %765 = vsyncadd (%p865_p8), %s209_s11, 4294967168  ;;  %p252_p9 = scmp.lt.s32.totalorder %s784_s15, 1  ;;  %v273_v0 = vlaneseq  ;;  %v795_v1 = vmov 1966171168   ;;  %v796_v4 = vmov 0.0   ;;  %v279_v6 = vld [vmem:[%s212_s18] sm:$0xff] }
  0x3a   : > { %v400_v2 = vunpack.c.l.s4 %v795_v1  ;;  %v280_v9 = vunpack.c.l.bf16 %v279_v6  ;;  %v281_v10 = vunpack.c.h.bf16 %v279_v6  ;;  %vm446_vm3 = vcmask 1040384   ;;  %s604_s23 = sshll.u32 %s784_s15, 4  ;;  %s249_s28 = scalar_lea.vmem [#allocation7], %s929_s5 }
  0x3b   : > { %s253_s6 = scalar_select %p252_p9, %s784_s15, 1  ;;  %vm939_vm0 = vcmp.lt.s32.totalorder %v273_v0, 256  ;;  %v950_v7 = vshrl.u32 %v273_v0, 7  ;;  %vm452_vm4 = vcmask 0   ;;  %vm471_vm5 = vcmask 8200  }
  0x3c   : > { %277 = vst.msk [vmem:[#allocation2] sm:$0x3] %vm939_vm0, %v796_v4  ;;  %278 = vst.msk [vmem:[#allocation3] sm:$0x3] %vm939_vm0, %v796_v4  ;;  %v401_v5 = vunpack.c.0.s8 %v400_v2  ;;  %v284_v13 = vrot.slane %v280_v9, 4  ;;  %v290_v14 = vrot.slane %v281_v10, 4  ;;  %s989_s7 = scalar_lea.hbm %s1041_s3, %s604_s23 }
  0x3d   : > { %s602_s24 = sshll.u32 %s253_s6, 1  ;;  %v965_v30 = vsub.s32 0, %v950_v7  ;;  %v328_v33 = vsub.s32 4, %v950_v7  ;;  %s486_s29 = sshll.u32 %s249_s28, 4  ;;  %s991_s29 = int_to_ptr.vmem [resolvable:$true] %s486_s29 }
  0x3e   : > { %s267_s10 = scalar_lea.vmem %s1040_s2, %s602_s24  ;;  %v955_v12 = vsub.s32 %v401_v5, %v950_v7  ;;  %v285_v17 = vmax.f32 %v280_v9, %v284_v13  ;;  %v291_v18 = vmax.f32 %v281_v10, %v290_v14  ;;  %s258_s22 = scalar_lea.vmem %s1039_s1, %s602_s24 }
  0x3f   : > { %v380_v8 = vld [vmem:[%s267_s10] sm:$0x3]  ;;  %s474_s11 = scalar_lea.sflag [#allocation6], %s929_s5  ;;  %s710_s18 = scalar_lea.vmem %s991_s29, 16 }
  0x40   : > { %v952_v11 = vunpack.c.l.bf16 %v380_v8  ;;  %v286_v20 = vrot.slane %v285_v17, 2  ;;  %v292_v21 = vrot.slane %v291_v18, 2  ;;  %v282_v24 = vld [vmem:[%s258_s22] sm:$0x3]  ;;  %p711_p8 = scmp.ne.s32.totalorder %s991_s29, %s710_s18  ;;  %p1052_p11 = scmp.ne.s32.totalorder %s1045_s25, 0 }
  0x41   : > { %v283_v29 = vunpack.c.0.s8 %v282_v24  ;;  %s797_s15 = smov [#allocation7]  }
  0x42   : > { %v427_v16 = vrot.slane %v952_v11, %v955_v12  ;;  %v287_v22 = vmax.f32 %v285_v17, %v286_v20  ;;  %v293_v23 = vmax.f32 %v291_v18, %v292_v21  ;;  %p712_p0 = pnand %p711_p8, %p1052_p11  ;;  %s714_s6 = sshll.u32 %s797_s15, 4  ;;  %s715_s6 = int_to_ptr.vmem [resolvable:$false] %s714_s6 }
  0x43   : > { %v420_v15 = vld [vmem:[#allocation3] sm:$0x3]  ;;  %v325_v36 = vrot.slane %v283_v29, %v965_v30  ;;  %v329_v39 = vrot.slane %v283_v29, %v328_v33  ;;  %v390_v29 = vsub.s32 2, %v950_v7  ;;  %s716_s24 = scalar_lea.vmem %s715_s6, 32  ;;  %p717_p13 = scmp.lt.s32.totalorder %s991_s29, %s715_s6 }
  0x44   : > { %v429_v19 = vadd.f32 %v427_v16, %v420_v15  ;;  %v288_v25 = vrot.slane %v287_v22, 1  ;;  %v294_v26 = vrot.slane %v293_v23, 1  ;;  %p713_p7 = pneg %p712_p0  ;;  %p718_p3 = scmp.lt.s32.totalorder %s716_s24, %s710_s18 }
  0x45   : > { %v333_v40 = vrot.slane %v325_v36, %v965_v30  ;;  %v337_v41 = vrot.slane %v329_v39, %v965_v30  ;;  %v391_v39 = vrot.slane %v952_v11, %v390_v29 }
  0x46   : > { %430 = vst.msk [vmem:[#allocation3] sm:$0x3] %vm939_vm0, %v429_v19  ;;  %v289_v27 = vmax.f32 %v287_v22, %v288_v25  ;;  %v295_v28 = vmax.f32 %v293_v23, %v294_v26  ;;  %p719_p6 = por %p718_p3, %p717_p13 }
  0x47   : > { %vm338_vm1 = vcmp.eq.s32.totalorder %v950_v7, %v333_v40  ;;  %vm339_vm2 = vcmp.eq.s32.totalorder %v950_v7, %v337_v41 }
  0x48   : > { %v296_v31 = vsub.f32 %v280_v9, %v289_v27  ;;  %v297_v32 = vsub.f32 %v281_v10, %v295_v28  ;;  %p720_p4 = pnand %p719_p6, %p713_p7 }
  0x4a   : > { %v298_v34 = vpack.c.bf16 %v296_v31, %v296_v31  ;;  %v299_v35 = vpack.c.bf16 %v297_v32, %v297_v32  ;;  %v340_v42 = vsel %vm338_vm1, %v296_v31, 0.0  ;;  %v341_v43 = vsel %vm339_vm2, %v297_v32, 0.0 }
  0x4b   : > { %v362_v44 = vrot.slane %v296_v31, 4  ;;  %v368_v45 = vrot.slane %v297_v32, 4  ;;  %v342_v47 = vrot.slane %v340_v42, 4  ;;  %v348_v50 = vrot.slane %v341_v43, 4 }
  0x4c   : > { %v301_v37 = vmul.bf16 1069105081, %v298_v34  ;;  %v304_v38 = vmul.bf16 1069105081, %v299_v35 }
  0x4d   : > { %v363_v52 = vadd.f32 %v362_v44, %v296_v31  ;;  %v369_v54 = vadd.f32 %v368_v45, %v297_v32  ;;  %v343_v56 = vadd.f32 %v342_v47, %v340_v42  ;;  %v349_v58 = vadd.f32 %v348_v50, %v341_v43 }
  0x4e   : > { %672 = vpow.bf16 %v301_v37  ;;  %v387_v37 = vrot.slane %v952_v11, %v965_v30  ;;  %v442_v50 = vsub.s32 1, %v950_v7 }
  0x4f   : > { %674 = vpow.bf16 %v304_v38  ;;  %v364_v60 = vrot.slane %v363_v52, 2  ;;  %v370_v62 = vrot.slane %v369_v54, 2  ;;  %v344_v0 = vrot.slane %v343_v56, 2 }
  0x50   : > { %v350_v2 = vrot.slane %v349_v58, 2 }
  0x51   : > { %v365_v5 = vadd.f32 %v364_v60, %v363_v52  ;;  %v371_v8 = vadd.f32 %v370_v62, %v369_v54  ;;  %v345_v10 = vadd.f32 %v344_v0, %v343_v56 }
  0x52   : > { %v351_v14 = vadd.f32 %v350_v2, %v349_v58 }
  0x53   : > { %v366_v16 = vrot.slane %v365_v5, 1  ;;  %v372_v17 = vrot.slane %v371_v8, 1  ;;  %v346_v18 = vrot.slane %v345_v10, 1 }
  0x54   : > { %v352_v19 = vrot.slane %v351_v14, 1 }
  0x55   : > { %v367_v20 = vadd.f32 %v366_v16, %v365_v5  ;;  %v373_v21 = vadd.f32 %v372_v17, %v371_v8  ;;  %v347_v22 = vadd.f32 %v346_v18, %v345_v10 }
  0x56   : > { %v353_v23 = vadd.f32 %v352_v19, %v351_v14 }
  0x57   : > { %v374_v24 = vmul.f32 0.125, %v367_v20  ;;  %v375_v25 = vmul.f32 0.125, %v373_v21  ;;  %v358_v26 = vmul.f32 0.9, %v347_v22 }
  0x58   : > { %v359_v28 = vmul.f32 0.9, %v353_v23 }
  0x59   : > { %v673_v46 = vpop.eup %672  ;;  %v376_v33 = vmul.f32 0.1, %v374_v24  ;;  %v377_v35 = vmul.f32 0.1, %v375_v25 }
  0x5a   : > { %v675_v48 = vpop.eup %674  ;;  %v306_v49 = vunpack.c.l.bf16 %v673_v46  ;;  %v382_v46 = vld [vmem:[#allocation2] sm:$0x3] }
  0x5b   : > { %v307_v51 = vunpack.c.l.bf16 %v675_v48 }
  0x5c   : > { %v308_v53 = vrot.slane %v306_v49, 4 }
  0x5d   : > { %v314_v55 = vrot.slane %v307_v51, 4 }
  0x5e   : > { %v309_v57 = vadd.f32 %v308_v53, %v306_v49  ;;  %v454_v49 = vld [vmem:[#allocation3] sm:$0x3] }
  0x5f   : > { %v315_v59 = vadd.f32 %v314_v55, %v307_v51  ;;  %v459_v51 = vrot.slane %v454_v49, %v965_v30  ;;  %v463_v11 = vrot.slane %v454_v49, %v442_v50 }
  0x60   : > { %v310_v61 = vrot.slane %v309_v57, 2 }
  0x61   : > { %v316_v63 = vrot.slane %v315_v59, 2 }
  0x62   : > { %v311_v1 = vadd.f32 %v310_v61, %v309_v57  ;;  %v467_v57 = vsel %vm446_vm3, %v463_v11, 0.0 }
  0x63   : > { %v317_v4 = vadd.f32 %v316_v63, %v315_v59 }
  0x64   : > { %v312_v6 = vrot.slane %v311_v1, 1 }
  0x65   : > { %v318_v9 = vrot.slane %v317_v4, 1 }
  0x66   : > { %v313_v13 = vadd.f32 %v312_v6, %v311_v1 }
  0x67   : > { %v319_v15 = vadd.f32 %v318_v9, %v317_v4 }
  0x68   : > { %676 = vlog2.f32 %v313_v13 }
  0x69   : > { %678 = vlog2.f32 %v319_v15 }
  0x72   : > { %v677_v27 = vpop.eup %676 }
  0x73   : > { %v679_v31 = vpop.eup %678  ;;  %v355_v32 = vmul.f32 0.6931472, %v677_v27 }
  0x74   : > { %v357_v34 = vmul.f32 0.6931472, %v679_v31 }
  0x75   : > { %v360_v36 = vsub.f32 %v355_v32, %v358_v26 }
  0x76   : > { %v361_v38 = vsub.f32 %v357_v34, %v359_v28 }
  0x77   : > { %v378_v40 = vsub.f32 %v360_v36, %v376_v33 }
  0x78   : > { %v379_v41 = vsub.f32 %v361_v38, %v377_v35 }
  0x79   : > { %v394_v42 = vmul.f32 %v387_v37, %v378_v40 }
  0x7a   : > { %v395_v43 = vmul.f32 %v391_v39, %v379_v41 }
  0x7c   : > { %v398_v44 = vcombine.low %v394_v42, %v395_v43 }
  0x7e   : > { %v405_v45 = vrot.slane %v398_v44, %v955_v12 }
  0x80   : > { %v412_v47 = vrot.slane %v405_v45, %v955_v12  ;;  %v466_v12 = vsel %vm446_vm3, %v459_v51, 0.0 }
  0x81   : > { %v468_v58 = vadd.f32 %v467_v57, %v466_v12 }
  0x82   : > { %v414_v48 = vadd.f32 %v412_v47, %v382_v46 }
  0x84   : > { %419 = vst.msk [vmem:[#allocation2] sm:$0x3] %vm939_vm0, %v414_v48 }
  0x8b   : > { %v434_v52 = vld [vmem:[#allocation2] sm:$0x3] }
  0x8c   : > { %v439_v53 = vrot.slane %v434_v52, %v965_v30  ;;  %v443_v54 = vrot.slane %v434_v52, %v442_v50 }
  0x8e   : > { %v447_v55 = vsel %vm446_vm3, %v439_v53, 0.0  ;;  %v448_v56 = vsel %vm446_vm3, %v443_v54, 0.0 }
  0x8f   : > { %v449_v3 = vadd.f32 %v448_v56, %v447_v55 }
  0x91   : > { %450 = vadd.xlane.f32.xlu0 %v449_v3 }
  0x95   : > { %469 = vadd.xlane.f32.xlu0 %v468_v58 }
 0x11e   : > { %v451_v7 = vpop.xlane.xlu0 %450 }
 0x11f   : > { %453 = vst.msk [vmem:[%s249_s28] sm:$0x1] %vm452_vm4, %v451_v7 }
 0x122   : > { %v470_v30 = vpop.xlane.xlu0 %469 }
 0x123   : > { %472 = vst.msk [vmem:[%s249_s28] sm:$0x1] %vm471_vm5, %v470_v30 }
 0x124   : > { %723 = shalt.err (!%p720_p4)
}
 0x125   : > { %s724_s5 = scalar_lea.hbm %s989_s7, 16  ;;  %s728_s10 = scalar_lea.hbm %s1041_s3, 32 }
 0x126   : > { %p725_p10 = scmp.ne.s32.totalorder %s989_s7, %s724_s5  ;;  %p729_p2 = scmp.lt.u32.totalorder %s989_s7, %s1041_s3 }
 0x127   : > { %p730_p5 = scmp.lt.u32.totalorder %s728_s10, %s724_s5  ;;  %p732_p8 = scmp.lt.u32.totalorder %s724_s5, %s989_s7 }
 0x128   : > { %p726_p12 = pnand %p725_p10, %p1052_p11 }
 0x129   : > { %p731_p9 = por %p730_p5, %p729_p2 }
 0x12a   : > { %p727_p1 = pneg %p726_p12 }
 0x12b   : > { %p733_p0 = por %p732_p8, %p731_p9 }
 0x12d   : > { %p734_p7 = pnand %p733_p0, %p727_p1 }
 0x12f   : > { %737 = shalt.err (!%p734_p7)
}
 0x130   : > { %610 = dma.vmem_to_hbm [thread:$0]  (%p1052_p11), %s991_s29, 16, %s989_s7, %s474_s11  }
 0x131 PF: > { %s498_s22 = sand.u32 1, %s772_s12   ;;  %p1053_p13 = scmp.ne.s32.totalorder %s1046_s27, 0 }
 0x132   : > { %p1054_p3 = scmp.ge.s32.totalorder %s792_s17, 2  ;;  %s499_s23 = scalar_lea.sflag [#allocation6], %s498_s22 }
 0x134   : > { %p617_p6 = pnand %p1054_p3, %p1053_p13 }
 0x136   : > { %767 = dma.done.wait (!%p617_p6), %s499_s23, 16  }
 0x137   : > { %769 = vsyncadd (!%p617_p6), %s499_s23, 4294967280  ;;  %s19_s17 = sadd.s32 1, %s792_s17   ;;  %s1055_s12 = smov %s776_s13 }
 0x138   : > { %p16_p4 = scmp.ge.s32.totalorder %s19_s17, 4   ;;  %s1056_s13 = smov %s780_s14 }
 0x139   : > { %s1057_s14 = smov %s874_s26  ;;  %s1058_s15 = smov %s788_s16 }
 0x13a   : > { %s1059_s16 = smov %s1061_s20  ;;  %18 = sbr.rel (!%p16_p4) target bundleno = 6 (0x6), region = 91 }
 0x141   :  { %503 = vsyncpa [#allocation5], 1 }
 0x142   :  { %505 = vsyncpa [#allocation5 + $0x1], 1 }
 0x143   :  { %506 = vsyncpa [#allocation6], 1 }
 0x144   :  { %508 = vsyncpa [#allocation6 + $0x1], 1 }

</bundles_post_ra>
